<compile_context>
chip_gen: v7x
topology: tpu7x:2x2x1
jax: 0.10.0
libtpu: 0.0.40
codegen_flags: <defaults>
</compile_context>

<pallas_src>
import jax
import jax.numpy as jnp
from jax.experimental import pallas as pl
from jax.experimental.pallas import tpu as pltpu

_LANE = 128
_SUBLANE = 8


def _round_up(x, m):
    return (x + m - 1) // m * m


def _make_kernel(sub_tb):
    def kernel(x_ref, w1_ref, b1_ref, w2_ref, b2_ref, w3_ref, b3_ref, o_ref):
        b1 = b1_ref[...]
        b2 = b2_ref[...]
        b3 = b3_ref[...]
        tb = x_ref.shape[0]
        cdt = w1_ref.dtype  # compute dtype (bf16)
        # Sub-tile the batch rows: each chunk runs all three matmuls back to
        # back, bounding the live range of the f32 intermediates.
        for r0 in range(0, tb, sub_tb):
            r1 = min(r0 + sub_tb, tb)
            x = x_ref[r0:r1, :].astype(cdt)  # in-kernel cast, no wrapper pass
            h = jnp.dot(x, w1_ref[...], preferred_element_type=jnp.float32) + b1
            h = jnp.maximum(h.astype(cdt), 0)  # ReLU in compute dtype
            h = jnp.dot(h, w2_ref[...], preferred_element_type=jnp.float32) + b2
            h = jnp.maximum(h.astype(cdt), 0)
            h = jnp.dot(h, w3_ref[...], preferred_element_type=jnp.float32) + b3
            o_ref[r0:r1, :] = h.astype(o_ref.dtype)

    return kernel


def prepare_params(params, compute_dtype=jnp.bfloat16):
    """One-time cast+pad of the Linear parameters (hoisted off the fwd path).

    Only the hidden dim is lane-padded (to a multiple of 128); n_input / n_output
    stay at their true sizes (block last-dim == full array dim is legal).
    """
    n_input = params["w1"].shape[0]
    n_hidden = params["w1"].shape[1]
    n_output = params["w3"].shape[1]
    n_hid_p = _round_up(n_hidden, _LANE)

    def padw(w, rows, cols):
        w = w.astype(compute_dtype)
        return jnp.pad(w, ((0, rows - w.shape[0]), (0, cols - w.shape[1])))

    def padb(b, cols):
        b = b.astype(jnp.float32).reshape(1, -1)
        return jnp.pad(b, ((0, 0), (0, cols - b.shape[1])))

    return dict(
        w1=padw(params["w1"], n_input, n_hid_p),
        b1=padb(params["b1"], n_hid_p),
        w2=padw(params["w2"], n_hid_p, n_hid_p),
        b2=padb(params["b2"], n_hid_p),
        w3=padw(params["w3"], n_hid_p, n_output),
        b3=padb(params["b3"], n_output),
    )


def network_forward(x, prepared, *, block_b=512):
    """Fused 3-layer MLP forward.  `prepared` comes from prepare_params()."""
    B, n_input = x.shape
    w1, b1 = prepared["w1"], prepared["b1"]
    w2, b2 = prepared["w2"], prepared["b2"]
    w3, b3 = prepared["w3"], prepared["b3"]
    assert w1.shape[0] == n_input
    n_hid_p = w1.shape[1]
    n_output = w3.shape[1]
    out_dtype = x.dtype
    out_itemsize = jnp.dtype(out_dtype).itemsize
    w_itemsize = jnp.dtype(w1.dtype).itemsize

    # --- batch tiling: aim for >= 2 grid steps (v7x dual TC), sublane aligned.
    tb = min(block_b, max(_SUBLANE, _round_up(-(-B // 2), _SUBLANE)))
    b_pad = _round_up(B, tb)
    grid_b = b_pad // tb
    sub_tb = min(tb, 256)  # in-kernel batch sub-tile

    # Pad the batch dim only when the tile doesn't divide B (f32, no cast).
    x_in = x if b_pad == B else jnp.pad(x, ((0, b_pad - B), (0, 0)))

    # --- VMEM budget ----------------------------------------------------------
    w_bytes = (n_input * n_hid_p + n_hid_p * n_hid_p + n_hid_p * n_output) * w_itemsize
    bias_bytes = (2 * n_hid_p + n_output) * 4
    x_tile = 2 * tb * n_input * jnp.dtype(x.dtype).itemsize      # double buffered
    o_tile = 2 * tb * n_output * out_itemsize                    # double buffered
    inter = 6 * sub_tb * n_hid_p * 4                             # f32/bf16 intermediates headroom
    need = w_bytes + bias_bytes + x_tile + o_tile + inter
    try:
        cap = int(pltpu.get_tpu_info().vmem_capacity_bytes * 0.85)
    except Exception:
        cap = 48 << 20  # safe on every generation (incl. v7x's 64 MiB)
    vmem_limit = int(min(cap, max(32 << 20, 2 * need)))
    # TODO(synk): for very large n_hidden (w2 ~ n_hidden^2 no longer VMEM-resident,
    # esp. on v7x) switch to a K-tiled reduction grid axis with an f32 accumulator.

    kernel = _make_kernel(sub_tb)
    out_shape = jax.ShapeDtypeStruct((b_pad, n_output), out_dtype)
    cparams = pltpu.CompilerParams(
        dimension_semantics=("parallel",),
        vmem_limit_bytes=vmem_limit,
    )

    def _build(single_buffer_residents):
        if single_buffer_residents:
            # Constant index_map -> fetched once; single buffer halves resident VMEM.
            def resident(shape):
                return pl.BlockSpec(shape, lambda i: (0, 0),
                                    pipeline_mode=pl.Buffered(1))
        else:
            def resident(shape):
                return pl.BlockSpec(shape, lambda i: (0, 0))
        return pl.pallas_call(
            kernel,
            out_shape=out_shape,
            grid=(grid_b,),
            in_specs=[
                pl.BlockSpec((tb, n_input), lambda i: (i, 0)),  # x streamed by batch tile
                resident((n_input, n_hid_p)),
                resident((1, n_hid_p)),
                resident((n_hid_p, n_hid_p)),
                resident((1, n_hid_p)),
                resident((n_hid_p, n_output)),
                resident((1, n_output)),
            ],
            out_specs=pl.BlockSpec((tb, n_output), lambda i: (i, 0)),
            compiler_params=cparams,
        )

    args = (x_in, w1, b1, w2, b2, w3, b3)
    try:
        out_p = _build(True)(*args)
    except Exception:
        # Fallback: default double-buffered residents (always supported).
        out_p = _build(False)(*args)

    return out_p if b_pad == B else out_p[:B]


def init_params(key, n_input, n_hidden, n_output):
    """Deterministic init mimicking nn.Linear's uniform(-1/sqrt(fan_in), .) scale."""
    ks = jax.random.split(key, 6)

    def lin(kw, kb, fan_in, fan_out):
        bound = 1.0 / jnp.sqrt(fan_in)
        w = jax.random.uniform(kw, (fan_in, fan_out), jnp.float32, -bound, bound)
        b = jax.random.uniform(kb, (fan_out,), jnp.float32, -bound, bound)
        return w, b

    w1, b1 = lin(ks[0], ks[1], n_input, n_hidden)
    w2, b2 = lin(ks[2], ks[3], n_hidden, n_hidden)
    w3, b3 = lin(ks[4], ks[5], n_hidden, n_output)
    return dict(w1=w1, b1=b1, w2=w2, b2=b2, w3=w3, b3=b3)


def _reference(x, p):
    h = jnp.maximum(x @ p["w1"] + p["b1"], 0.0)
    h = jnp.maximum(h @ p["w2"] + p["b2"], 0.0)
    return h @ p["w3"] + p["b3"]


if __name__ == "__main__":
    key = jax.random.PRNGKey(0)
    k_x, k_p = jax.random.split(key)

    B, n_input, n_hidden, n_output = 8, 32, 64, 16
    x = jax.random.normal(k_x, (B, n_input), jnp.float32)
    params = init_params(k_p, n_input, n_hidden, n_output)

    prepared = prepare_params(params)          # one-time cast+pad (off the fwd path)
    out = network_forward(x, prepared)
    out = jax.block_until_ready(out)

    ref = _reference(x, params)
    assert out.shape == (B, n_output)
    # bf16 matmul inputs with f32 accumulation -> relaxed tolerance vs f32 reference.
    assert jnp.allclose(out, ref, atol=5e-2, rtol=5e-2), "mismatch vs JAX reference"

    print("KERNEL_OK")
</pallas_src>

<mosaic_0001>
module attributes {stable_mosaic.version = 11 : i64} {
  func.func @kernel(%arg0: i32, %arg1: memref<8x32xf32, #tpu.memory_space<vmem>>, %arg2: memref<32x128xbf16, #tpu.memory_space<vmem>>, %arg3: memref<1x128xf32, #tpu.memory_space<vmem>>, %arg4: memref<128x128xbf16, #tpu.memory_space<vmem>>, %arg5: memref<1x128xf32, #tpu.memory_space<vmem>>, %arg6: memref<128x16xbf16, #tpu.memory_space<vmem>>, %arg7: memref<1x16xf32, #tpu.memory_space<vmem>>, %arg8: memref<8x16xf32, #tpu.memory_space<vmem>>) attributes {dimension_semantics = [#tpu.dimension_semantics<parallel>], iteration_bounds = array<i64: 1>, scalar_prefetch = 0 : i64, scratch_operands = 0 : i64, tpu.core_type = #tpu.core_type<tc>, window_params = [{transform_indices = @transform_0, window_bounds = array<i64: 8, 32>}, {pipeline_mode = #tpu.pipeline_mode<synchronous>, transform_indices = @transform_1, window_bounds = array<i64: 32, 128>}, {pipeline_mode = #tpu.pipeline_mode<synchronous>, transform_indices = @transform_2, window_bounds = array<i64: 1, 128>}, {pipeline_mode = #tpu.pipeline_mode<synchronous>, transform_indices = @transform_3, window_bounds = array<i64: 128, 128>}, {pipeline_mode = #tpu.pipeline_mode<synchronous>, transform_indices = @transform_4, window_bounds = array<i64: 1, 128>}, {pipeline_mode = #tpu.pipeline_mode<synchronous>, transform_indices = @transform_5, window_bounds = array<i64: 128, 16>}, {pipeline_mode = #tpu.pipeline_mode<synchronous>, transform_indices = @transform_6, window_bounds = array<i64: 1, 16>}, {transform_indices = @transform_7, window_bounds = array<i64: 8, 16>}]} {
    %c0 = arith.constant 0 : index
    %c0_0 = arith.constant 0 : index
    %0 = vector.load %arg3[%c0, %c0_0] : memref<1x128xf32, #tpu.memory_space<vmem>>, vector<1x128xf32>
    %c0_1 = arith.constant 0 : index
    %c0_2 = arith.constant 0 : index
    %1 = vector.load %arg5[%c0_1, %c0_2] : memref<1x128xf32, #tpu.memory_space<vmem>>, vector<1x128xf32>
    %c0_3 = arith.constant 0 : index
    %c0_4 = arith.constant 0 : index
    %2 = vector.load %arg7[%c0_3, %c0_4] : memref<1x16xf32, #tpu.memory_space<vmem>>, vector<1x16xf32>
    %c0_5 = arith.constant 0 : index
    %c0_6 = arith.constant 0 : index
    %3 = vector.load %arg1[%c0_5, %c0_6] : memref<8x32xf32, #tpu.memory_space<vmem>>, vector<8x32xf32>
    %4 = arith.truncf %3 : vector<8x32xf32> to vector<8x32xbf16>
    %c0_7 = arith.constant 0 : index
    %c0_8 = arith.constant 0 : index
    %5 = vector.load %arg2[%c0_7, %c0_8] : memref<32x128xbf16, #tpu.memory_space<vmem>>, vector<32x128xbf16>
    %cst = arith.constant dense<0.000000e+00> : vector<8x128xf32>
    %6 = tpu.matmul %4, %5, %cst {dimension_numbers = #tpu.dot_dimension_numbers<[1], [0], [0], [1], [0, 0, 1, 1], [], []>} : vector<8x32xbf16>, vector<32x128xbf16>, vector<8x128xf32> -> vector<8x128xf32>
    %7 = vector.broadcast %0 : vector<1x128xf32> to vector<8x128xf32>
    %8 = arith.addf %6, %7 : vector<8x128xf32>
    %9 = arith.truncf %8 : vector<8x128xf32> to vector<8x128xbf16>
    %cst_9 = arith.constant 0.000000e+00 : bf16
    %10 = vector.broadcast %cst_9 : bf16 to vector<8x128xbf16>
    %11 = arith.maximumf %9, %10 : vector<8x128xbf16>
    %c0_10 = arith.constant 0 : index
    %c0_11 = arith.constant 0 : index
    %12 = vector.load %arg4[%c0_10, %c0_11] : memref<128x128xbf16, #tpu.memory_space<vmem>>, vector<128x128xbf16>
    %cst_12 = arith.constant dense<0.000000e+00> : vector<8x128xf32>
    %13 = tpu.matmul %11, %12, %cst_12 {dimension_numbers = #tpu.dot_dimension_numbers<[1], [0], [0], [1], [0, 0, 1, 1], [], []>} : vector<8x128xbf16>, vector<128x128xbf16>, vector<8x128xf32> -> vector<8x128xf32>
    %14 = vector.broadcast %1 : vector<1x128xf32> to vector<8x128xf32>
    %15 = arith.addf %13, %14 : vector<8x128xf32>
    %16 = arith.truncf %15 : vector<8x128xf32> to vector<8x128xbf16>
    %cst_13 = arith.constant 0.000000e+00 : bf16
    %17 = vector.broadcast %cst_13 : bf16 to vector<8x128xbf16>
    %18 = arith.maximumf %16, %17 : vector<8x128xbf16>
    %c0_14 = arith.constant 0 : index
    %c0_15 = arith.constant 0 : index
    %19 = vector.load %arg6[%c0_14, %c0_15] : memref<128x16xbf16, #tpu.memory_space<vmem>>, vector<128x16xbf16>
    %cst_16 = arith.constant dense<0.000000e+00> : vector<8x16xf32>
    %20 = tpu.matmul %18, %19, %cst_16 {dimension_numbers = #tpu.dot_dimension_numbers<[1], [0], [0], [1], [0, 0, 1, 1], [], []>} : vector<8x128xbf16>, vector<128x16xbf16>, vector<8x16xf32> -> vector<8x16xf32>
    %21 = vector.broadcast %2 : vector<1x16xf32> to vector<8x16xf32>
    %22 = arith.addf %20, %21 : vector<8x16xf32>
    %c0_17 = arith.constant 0 : index
    %c0_18 = arith.constant 0 : index
    %23 = vector.load %arg8[%c0_17, %c0_18] : memref<8x16xf32, #tpu.memory_space<vmem>>, vector<8x16xf32>
    tpu.vector_store %arg8[%c0_17, %c0_18], %22 {strides = array<i32>} : memref<8x16xf32, #tpu.memory_space<vmem>>, vector<8x16xf32>,
    return
  }
  func.func @transform_0(%arg0: i32) -> (i32, i32) {
    %c0_i32 = arith.constant 0 : i32
    %c0_i32_0 = arith.constant 0 : i32
    return %arg0, %c0_i32 : i32, i32
  }
  func.func @transform_1(%arg0: i32) -> (i32, i32) {
    %c0_i32 = arith.constant 0 : i32
    %c0_i32_0 = arith.constant 0 : i32
    %c0_i32_1 = arith.constant 0 : i32
    return %c0_i32, %c0_i32_0 : i32, i32
  }
  func.func @transform_2(%arg0: i32) -> (i32, i32) {
    %c0_i32 = arith.constant 0 : i32
    %c0_i32_0 = arith.constant 0 : i32
    %c0_i32_1 = arith.constant 0 : i32
    return %c0_i32, %c0_i32_0 : i32, i32
  }
  func.func @transform_3(%arg0: i32) -> (i32, i32) {
    %c0_i32 = arith.constant 0 : i32
    %c0_i32_0 = arith.constant 0 : i32
    %c0_i32_1 = arith.constant 0 : i32
    return %c0_i32, %c0_i32_0 : i32, i32
  }
  func.func @transform_4(%arg0: i32) -> (i32, i32) {
    %c0_i32 = arith.constant 0 : i32
    %c0_i32_0 = arith.constant 0 : i32
    %c0_i32_1 = arith.constant 0 : i32
    return %c0_i32, %c0_i32_0 : i32, i32
  }
  func.func @transform_5(%arg0: i32) -> (i32, i32) {
    %c0_i32 = arith.constant 0 : i32
    %c0_i32_0 = arith.constant 0 : i32
    %c0_i32_1 = arith.constant 0 : i32
    return %c0_i32, %c0_i32_0 : i32, i32
  }
  func.func @transform_6(%arg0: i32) -> (i32, i32) {
    %c0_i32 = arith.constant 0 : i32
    %c0_i32_0 = arith.constant 0 : i32
    %c0_i32_1 = arith.constant 0 : i32
    return %c0_i32, %c0_i32_0 : i32, i32
  }
  func.func @transform_7(%arg0: i32) -> (i32, i32) {
    %c0_i32 = arith.constant 0 : i32
    %c0_i32_0 = arith.constant 0 : i32
    return %arg0, %c0_i32 : i32, i32
  }
}

module attributes {stable_mosaic.version = 11 : i64} {
  func.func @kernel(%arg0: i32, %arg1: memref<8x32xf32, #tpu.memory_space<vmem>>, %arg2: memref<32x128xbf16, #tpu.memory_space<vmem>>, %arg3: memref<1x128xf32, #tpu.memory_space<vmem>>, %arg4: memref<128x128xbf16, #tpu.memory_space<vmem>>, %arg5: memref<1x128xf32, #tpu.memory_space<vmem>>, %arg6: memref<128x16xbf16, #tpu.memory_space<vmem>>, %arg7: memref<1x16xf32, #tpu.memory_space<vmem>>, %arg8: memref<8x16xf32, #tpu.memory_space<vmem>>) attributes {dimension_semantics = [#tpu.dimension_semantics<parallel>], iteration_bounds = array<i64: 1>, scalar_prefetch = 0 : i64, scratch_operands = 0 : i64, tpu.core_type = #tpu.core_type<tc>, window_params = [{transform_indices = @transform_0, window_bounds = array<i64: 8, 32>}, {pipeline_mode = #tpu.pipeline_mode<synchronous>, transform_indices = @transform_1, window_bounds = array<i64: 32, 128>}, {pipeline_mode = #tpu.pipeline_mode<synchronous>, transform_indices = @transform_2, window_bounds = array<i64: 1, 128>}, {pipeline_mode = #tpu.pipeline_mode<synchronous>, transform_indices = @transform_3, window_bounds = array<i64: 128, 128>}, {pipeline_mode = #tpu.pipeline_mode<synchronous>, transform_indices = @transform_4, window_bounds = array<i64: 1, 128>}, {pipeline_mode = #tpu.pipeline_mode<synchronous>, transform_indices = @transform_5, window_bounds = array<i64: 128, 16>}, {pipeline_mode = #tpu.pipeline_mode<synchronous>, transform_indices = @transform_6, window_bounds = array<i64: 1, 16>}, {transform_indices = @transform_7, window_bounds = array<i64: 8, 16>}]} {
    %c0 = arith.constant 0 : index
    %c0_0 = arith.constant 0 : index
    %0 = vector.load %arg3[%c0, %c0_0] : memref<1x128xf32, #tpu.memory_space<vmem>>, vector<1x128xf32>
    %c0_1 = arith.constant 0 : index
    %c0_2 = arith.constant 0 : index
    %1 = vector.load %arg5[%c0_1, %c0_2] : memref<1x128xf32, #tpu.memory_space<vmem>>, vector<1x128xf32>
    %c0_3 = arith.constant 0 : index
    %c0_4 = arith.constant 0 : index
    %2 = vector.load %arg7[%c0_3, %c0_4] : memref<1x16xf32, #tpu.memory_space<vmem>>, vector<1x16xf32>
    %c0_5 = arith.constant 0 : index
    %c0_6 = arith.constant 0 : index
    %3 = vector.load %arg1[%c0_5, %c0_6] : memref<8x32xf32, #tpu.memory_space<vmem>>, vector<8x32xf32>
    %4 = arith.truncf %3 : vector<8x32xf32> to vector<8x32xbf16>
    %c0_7 = arith.constant 0 : index
    %c0_8 = arith.constant 0 : index
    %5 = vector.load %arg2[%c0_7, %c0_8] : memref<32x128xbf16, #tpu.memory_space<vmem>>, vector<32x128xbf16>
    %cst = arith.constant dense<0.000000e+00> : vector<8x128xf32>
    %6 = tpu.matmul %4, %5, %cst {dimension_numbers = #tpu.dot_dimension_numbers<[1], [0], [0], [1], [0, 0, 1, 1], [], []>} : vector<8x32xbf16>, vector<32x128xbf16>, vector<8x128xf32> -> vector<8x128xf32>
    %7 = vector.broadcast %0 : vector<1x128xf32> to vector<8x128xf32>
    %8 = arith.addf %6, %7 : vector<8x128xf32>
    %9 = arith.truncf %8 : vector<8x128xf32> to vector<8x128xbf16>
    %cst_9 = arith.constant 0.000000e+00 : bf16
    %10 = vector.broadcast %cst_9 : bf16 to vector<8x128xbf16>
    %11 = arith.maximumf %9, %10 : vector<8x128xbf16>
    %c0_10 = arith.constant 0 : index
    %c0_11 = arith.constant 0 : index
    %12 = vector.load %arg4[%c0_10, %c0_11] : memref<128x128xbf16, #tpu.memory_space<vmem>>, vector<128x128xbf16>
    %cst_12 = arith.constant dense<0.000000e+00> : vector<8x128xf32>
    %13 = tpu.matmul %11, %12, %cst_12 {dimension_numbers = #tpu.dot_dimension_numbers<[1], [0], [0], [1], [0, 0, 1, 1], [], []>} : vector<8x128xbf16>, vector<128x128xbf16>, vector<8x128xf32> -> vector<8x128xf32>
    %14 = vector.broadcast %1 : vector<1x128xf32> to vector<8x128xf32>
    %15 = arith.addf %13, %14 : vector<8x128xf32>
    %16 = arith.truncf %15 : vector<8x128xf32> to vector<8x128xbf16>
    %cst_13 = arith.constant 0.000000e+00 : bf16
    %17 = vector.broadcast %cst_13 : bf16 to vector<8x128xbf16>
    %18 = arith.maximumf %16, %17 : vector<8x128xbf16>
    %c0_14 = arith.constant 0 : index
    %c0_15 = arith.constant 0 : index
    %19 = vector.load %arg6[%c0_14, %c0_15] : memref<128x16xbf16, #tpu.memory_space<vmem>>, vector<128x16xbf16>
    %cst_16 = arith.constant dense<0.000000e+00> : vector<8x16xf32>
    %20 = tpu.matmul %18, %19, %cst_16 {dimension_numbers = #tpu.dot_dimension_numbers<[1], [0], [0], [1], [0, 0, 1, 1], [], []>} : vector<8x128xbf16>, vector<128x16xbf16>, vector<8x16xf32> -> vector<8x16xf32>
    %21 = vector.broadcast %2 : vector<1x16xf32> to vector<8x16xf32>
    %22 = arith.addf %20, %21 : vector<8x16xf32>
    %c0_17 = arith.constant 0 : index
    %c0_18 = arith.constant 0 : index
    %23 = vector.load %arg8[%c0_17, %c0_18] : memref<8x16xf32, #tpu.memory_space<vmem>>, vector<8x16xf32>
    tpu.vector_store %arg8[%c0_17, %c0_18], %22 {strides = array<i32>} : memref<8x16xf32, #tpu.memory_space<vmem>>, vector<8x16xf32>,
    return
  }
  func.func @transform_0(%arg0: i32) -> (i32, i32) {
    %c0_i32 = arith.constant 0 : i32
    %c0_i32_0 = arith.constant 0 : i32
    return %arg0, %c0_i32 : i32, i32
  }
  func.func @transform_1(%arg0: i32) -> (i32, i32) {
    %c0_i32 = arith.constant 0 : i32
    %c0_i32_0 = arith.constant 0 : i32
    %c0_i32_1 = arith.constant 0 : i32
    return %c0_i32, %c0_i32_0 : i32, i32
  }
  func.func @transform_2(%arg0: i32) -> (i32, i32) {
    %c0_i32 = arith.constant 0 : i32
    %c0_i32_0 = arith.constant 0 : i32
    %c0_i32_1 = arith.constant 0 : i32
    return %c0_i32, %c0_i32_0 : i32, i32
  }
  func.func @transform_3(%arg0: i32) -> (i32, i32) {
    %c0_i32 = arith.constant 0 : i32
    %c0_i32_0 = arith.constant 0 : i32
    %c0_i32_1 = arith.constant 0 : i32
    return %c0_i32, %c0_i32_0 : i32, i32
  }
  func.func @transform_4(%arg0: i32) -> (i32, i32) {
    %c0_i32 = arith.constant 0 : i32
    %c0_i32_0 = arith.constant 0 : i32
    %c0_i32_1 = arith.constant 0 : i32
    return %c0_i32, %c0_i32_0 : i32, i32
  }
  func.func @transform_5(%arg0: i32) -> (i32, i32) {
    %c0_i32 = arith.constant 0 : i32
    %c0_i32_0 = arith.constant 0 : i32
    %c0_i32_1 = arith.constant 0 : i32
    return %c0_i32, %c0_i32_0 : i32, i32
  }
  func.func @transform_6(%arg0: i32) -> (i32, i32) {
    %c0_i32 = arith.constant 0 : i32
    %c0_i32_0 = arith.constant 0 : i32
    %c0_i32_1 = arith.constant 0 : i32
    return %c0_i32, %c0_i32_0 : i32, i32
  }
  func.func @transform_7(%arg0: i32) -> (i32, i32) {
    %c0_i32 = arith.constant 0 : i32
    %c0_i32_0 = arith.constant 0 : i32
    return %arg0, %c0_i32 : i32, i32
  }
}

</mosaic_0001>

<bundles_post_ra>
// kernel: tpu_custom_call.1
= control target key start
LH: loop header
LB: loop body
LE: loop exit
PB: predicated region body
PF: predicated region fallthrough
CT: control target
= control target key end

     0   :  { %12 = vsyncpa [#allocation3], 0  ;;  %s670_s0 = inlined_call_operand.hbm [shape: f32[8,32], index: 0, kind: input, shape index: {}]   ;;  %s671_s1 = inlined_call_operand.vmem [shape: bf16[32,128], index: 1, kind: input, shape index: {}]   ;;  %s672_s2 = inlined_call_operand.vmem [shape: f32[1,128], index: 2, kind: input, shape index: {}]   ;;  %s673_s3 = inlined_call_operand.vmem [shape: bf16[128,128], index: 3, kind: input, shape index: {}]   ;;  %s674_s4 = inlined_call_operand.vmem [shape: f32[1,128], index: 4, kind: input, shape index: {}]   ;;  %s675_s5 = inlined_call_operand.vmem [shape: bf16[128,16], index: 5, kind: input, shape index: {}]   ;;  %s676_s6 = inlined_call_operand.vmem [shape: f32[1,16], index: 6, kind: input, shape index: {}]   ;;  %s677_s7 = inlined_call_operand.hbm [shape: f32[8,16], index: 7, kind: output, shape index: {}]  }
   0x1   :  { %13 = vsyncpa [#allocation4], 0  ;;  %s514_s24 = smov [#allocation2]   ;;  %s466_s28 = scalar_lea.hbm %s670_s0, 128 }
   0x2   :  { %s20_s25 = sshll.u32 %s514_s24, 4  ;;  %p467_p0 = scmp.ne.s32.totalorder %s670_s0, %s466_s28  ;;  %s21_s25 = int_to_ptr.vmem [resolvable:$true] %s20_s25 }
   0x3   :  { %p470_p1 = scmp.lt.u32.totalorder %s466_s28, %s670_s0 }
   0x5   :  { %p472_p2 = pnand %p470_p1, %p467_p0 }
   0x7   :  { %475 = shalt.err (!%p472_p2)
}
   0x8   :  { %s476_s10 = scalar_lea.vmem %s21_s25, 128  ;;  %p481_p4 = scmp.lt.s32.totalorder %s21_s25, %s21_s25 }
   0x9   :  { %p477_p3 = scmp.ne.s32.totalorder %s21_s25, %s476_s10  ;;  %p482_p5 = scmp.lt.s32.totalorder %s476_s10, %s476_s10 }
   0xb   :  { %p483_p6 = por %p482_p5, %p481_p4 }
   0xd   :  { %p484_p7 = pnand %p483_p6, %p477_p3 }
   0xf   :  { %487 = shalt.err (!%p484_p7)
}
  0x10   :  { %23 = dma.hbm_to_vmem [thread:$0]  %s670_s0, 128, %s21_s25, [#allocation3]  }
  0x11   :  { %510 = dma.done.wait [#allocation3], 128  }
  0x12   :  { %511 = vsyncadd [#allocation3], 4294967168  ;;  %v515_v0 = vmov 0.0   ;;  %vm516_vm0 = vmmov 0   ;;  %v448_v1 = vld [vmem:[%s671_s1] sm:$0xff]   ;;  %v449_v2 = vld [vmem:[%s671_s1 + $0x8] sm:$0xff]  }
  0x13   :  { %395 = vmatprep.subr.bf16.mxu0 %v515_v0  ;;  %399 = vmatprep.mubr.msk.bf16.mxu0 %vm516_vm0, %v515_v0  ;;  %v43_v3 = vld [vmem:[#allocation2] sm:$0xff]  ;;  %v451_v6 = vld [vmem:[%s673_s3 + $0x8] sm:$0xff]   ;;  %vm67_vm1 = vcmask 261120   ;;  %v452_v7 = vld [vmem:[%s673_s3 + $0x10] sm:$0xff]   ;;  %v517_v26 = vmov 0   ;;  %s518_s26 = smov [#allocation5]  }
  0x14   :  { %403 = vmatprep.subr.bf16.mxu1 %v515_v0  ;;  %419 = vmatprep.mubr.msk.bf16.mxu1 %vm516_vm0, %v515_v0  ;;  %v450_v4 = vld [vmem:[%s673_s3] sm:$0xff]   ;;  %v44_v5 = vpack.c.bf16 %v43_v3, %v43_v3  ;;  %v453_v8 = vld [vmem:[%s673_s3 + $0x18] sm:$0xff]   ;;  %v455_v10 = vld [vmem:[%s673_s3 + $0x28] sm:$0xff]   ;;  %s343_s27 = sshll.u32 %s518_s26, 4  ;;  %vm335_vm2 = vcmask 130048   ;;  %s344_s27 = int_to_ptr.vmem [resolvable:$true] %s343_s27 }
  0x15   :  { %396 = vmatpush3.bf16.msra.mxu0 %v448_v1  ;;  %404 = vmatpush3.bf16.msra.mxu1 %v450_v4  ;;  %v454_v9 = vld [vmem:[%s673_s3 + $0x20] sm:$0xff]   ;;  %v456_v11 = vld [vmem:[%s673_s3 + $0x30] sm:$0xff]   ;;  %v457_v12 = vld [vmem:[%s673_s3 + $0x38] sm:$0xff]   ;;  %p493_p9 = scmp.lt.s32.totalorder %s344_s27, %s344_s27 }
  0x16   :  { %397 = vmatprep.subr.bf16.mxu0 %v515_v0  ;;  %405 = vmatprep.subr.bf16.mxu1 %v515_v0  ;;  %v458_v13 = vld [vmem:[%s675_s5] sm:$0xff]   ;;  %v459_v14 = vld [vmem:[%s675_s5 + $0x8] sm:$0xff]   ;;  %v460_v15 = vld [vmem:[%s675_s5 + $0x10] sm:$0xff]  }
  0x17   :  { %v461_v16 = vld [vmem:[%s675_s5 + $0x18] sm:$0xff]   ;;  %v462_v17 = vld [vmem:[%s675_s5 + $0x20] sm:$0xff]   ;;  %v463_v18 = vld [vmem:[%s675_s5 + $0x28] sm:$0xff]  }
  0x18   :  { %v352_v19 = vld [vmem:[%s672_s2] ss:$0 sm:$0xff]  ;;  %v464_v28 = vld [vmem:[%s675_s5 + $0x30] sm:$0xff]   ;;  %v465_v29 = vld [vmem:[%s675_s5 + $0x38] sm:$0xff]  }
  0x19   :  { %398 = vmatpush3.bf16.msra.mxu0 %v449_v2  ;;  %406 = vmatpush3.bf16.msra.mxu1 %v451_v6  ;;  %v356_v30 = vld [vmem:[%s674_s4] ss:$0 sm:$0xff]  ;;  %s488_s4 = scalar_lea.vmem %s344_s27, 128 }
  0x1a   :  { %423 = vmatprep.subr.bf16.mxu0 %v515_v0  ;;  %407 = vmatprep.subr.bf16.mxu1 %v515_v0  ;;  %v365_v38 = vld [vmem:[%s676_s6] ss:$0 sm:$0xff]  ;;  %p489_p8 = scmp.ne.s32.totalorder %s344_s27, %s488_s4  ;;  %p494_p10 = scmp.lt.s32.totalorder %s488_s4, %s488_s4 }
  0x1c   :  { %400 = vmatmul.mubr.msk.bf16.vlgmr.msra.gmra.mrb[0].mxu0 %vm67_vm1, %v44_v5  ;;  %p495_p11 = por %p494_p10, %p493_p9 }
  0x1d   :  { %439 = vmatprep.mubr.msk.bf16.mxu0 %vm516_vm0, %v515_v0  ;;  %408 = vmatpush3.bf16.msra.mxu1 %v452_v7 }
  0x1e   :  { %409 = vmatprep.subr.bf16.mxu1 %v515_v0  ;;  %424 = vmatpush3.bf16.msra.mxu0 %v458_v13  ;;  %p496_p12 = pnand %p495_p11, %p489_p8 }
  0x1f   :  { %425 = vmatprep.subr.bf16.mxu0 %v515_v0 }
  0x21   :  { %410 = vmatpush3.bf16.msra.mxu1 %v453_v8 }
  0x22   :  { %411 = vmatprep.subr.bf16.mxu1 %v515_v0  ;;  %426 = vmatpush3.bf16.msra.mxu0 %v459_v14 }
  0x23   :  { %427 = vmatprep.subr.bf16.mxu0 %v515_v0 }
  0x25   :  { %412 = vmatpush3.bf16.msra.mxu1 %v454_v9 }
  0x26   :  { %413 = vmatprep.subr.bf16.mxu1 %v515_v0  ;;  %428 = vmatpush3.bf16.msra.mxu0 %v460_v15 }
  0x27   :  { %429 = vmatprep.subr.bf16.mxu0 %v515_v0 }
  0x29   :  { %414 = vmatpush3.bf16.msra.mxu1 %v455_v10 }
  0x2a   :  { %415 = vmatprep.subr.bf16.mxu1 %v515_v0  ;;  %430 = vmatpush3.bf16.msra.mxu0 %v461_v16 }
  0x2b   :  { %431 = vmatprep.subr.bf16.mxu0 %v515_v0 }
  0x2d   :  { %416 = vmatpush3.bf16.msra.mxu1 %v456_v11 }
  0x2e   :  { %417 = vmatprep.subr.bf16.mxu1 %v515_v0  ;;  %432 = vmatpush3.bf16.msra.mxu0 %v462_v17 }
  0x2f   :  { %433 = vmatprep.subr.bf16.mxu0 %v515_v0 }
  0x31   :  { %418 = vmatpush3.bf16.msra.mxu1 %v457_v12 }
  0x32   :  { %434 = vmatpush3.bf16.msra.mxu0 %v463_v18 }
  0x33   :  { %435 = vmatprep.subr.bf16.mxu0 %v515_v0 }
  0x36   :  { %436 = vmatpush3.bf16.msra.mxu0 %v464_v28 }
  0x37   :  { %437 = vmatprep.subr.bf16.mxu0 %v515_v0 }
  0x3a   :  { %438 = vmatpush3.bf16.msra.mxu0 %v465_v29 }
  0xef   :  { %v105_v20 = vpop.f32.mrb[0].mxu0 }
  0xf0   :  { %v106_v21 = vadd.f32 %v352_v19, %v105_v20  ;;  %v401_v22 = vpop.f32.mrb[1].mxu0 }
  0xf1   :  { %v108_v23 = vpop.f32.mrb[2].mxu0 }
  0xf2   :  { %v111_v24 = vpack.c.bf16 %v106_v21, %v106_v21  ;;  %v402_v25 = vpop.f32.mrb[3].mxu0 }
  0xf4   :  { %v112_v27 = vmax.bf16 %v517_v26, %v111_v24 }
  0xf6   :  { %420 = vmatmul.mubr.bf16.vlgmr.msra.gmra.mrb[0].mxu1 %v112_v27 }
 0x1c9   :  { %v217_v31 = vpop.f32.mrb[0].mxu1 }
 0x1ca   :  { %v218_v32 = vadd.f32 %v356_v30, %v217_v31  ;;  %v421_v33 = vpop.f32.mrb[1].mxu1 }
 0x1cb   :  { %v220_v34 = vpop.f32.mrb[2].mxu1 }
 0x1cc   :  { %v223_v35 = vpack.c.bf16 %v218_v32, %v218_v32  ;;  %v422_v36 = vpop.f32.mrb[3].mxu1 }
 0x1ce   :  { %v224_v37 = vmax.bf16 %v517_v26, %v223_v35 }
 0x1d0   :  { %440 = vmatmul.mubr.bf16.vlgmr.msra.gmra.mrb[4].mxu0 %v224_v37 }
 0x2a3   :  { %v329_v39 = vpop.f32.mrb[4].mxu0 }
 0x2a4   :  { %v330_v40 = vadd.f32 %v365_v38, %v329_v39  ;;  %v441_v41 = vpop.f32.mrb[5].mxu0 }
 0x2a5   :  { %v332_v42 = vpop.f32.mrb[6].mxu0 }
 0x2a6   :  { %v442_v43 = vpop.f32.mrb[7].mxu0  ;;  %336 = vst.msk [vmem:[#allocation5] sm:$0xff] %vm335_vm2, %v330_v40 }
 0x2a7   :  { %499 = shalt.err (!%p496_p12)
}
 0x2a8   :  { %s500_s6 = scalar_lea.hbm %s677_s7, 128 }
 0x2a9   :  { %p501_p13 = scmp.ne.s32.totalorder %s677_s7, %s500_s6  ;;  %p504_p0 = scmp.lt.u32.totalorder %s500_s6, %s677_s7 }
 0x2ab   :  { %p506_p1 = pnand %p504_p0, %p501_p13 }
 0x2ad   :  { %509 = shalt.err (!%p506_p1)
}
 0x2ae   :  { %346 = dma.vmem_to_hbm [thread:$0]  %s344_s27, 128, %s677_s7, [#allocation4]  }
 0x2af   :  { %512 = dma.done.wait [#allocation4], 128  }
 0x2b0   :  { %513 = vsyncadd [#allocation4], 4294967168 }
 0x2b1   :  { %350 = vsyncpa [#allocation3], 1 }
 0x2b2   :  { %351 = vsyncpa [#allocation4], 1 }

// kernel: tpu_custom_call.1
= control target key start
LH: loop header
LB: loop body
LE: loop exit
PB: predicated region body
PF: predicated region fallthrough
CT: control target
= control target key end

     0   :  { %12 = vsyncpa [#allocation3], 0  ;;  %s670_s0 = inlined_call_operand.hbm [shape: f32[8,32], index: 0, kind: input, shape index: {}]   ;;  %s671_s1 = inlined_call_operand.vmem [shape: bf16[32,128], index: 1, kind: input, shape index: {}]   ;;  %s672_s2 = inlined_call_operand.vmem [shape: f32[1,128], index: 2, kind: input, shape index: {}]   ;;  %s673_s3 = inlined_call_operand.vmem [shape: bf16[128,128], index: 3, kind: input, shape index: {}]   ;;  %s674_s4 = inlined_call_operand.vmem [shape: f32[1,128], index: 4, kind: input, shape index: {}]   ;;  %s675_s5 = inlined_call_operand.vmem [shape: bf16[128,16], index: 5, kind: input, shape index: {}]   ;;  %s676_s6 = inlined_call_operand.vmem [shape: f32[1,16], index: 6, kind: input, shape index: {}]   ;;  %s677_s7 = inlined_call_operand.hbm [shape: f32[8,16], index: 7, kind: output, shape index: {}]  }
   0x1   :  { %13 = vsyncpa [#allocation4], 0  ;;  %s514_s24 = smov [#allocation2]   ;;  %s466_s28 = scalar_lea.hbm %s670_s0, 128 }
   0x2   :  { %s20_s25 = sshll.u32 %s514_s24, 4  ;;  %p467_p0 = scmp.ne.s32.totalorder %s670_s0, %s466_s28  ;;  %s21_s25 = int_to_ptr.vmem [resolvable:$true] %s20_s25 }
   0x3   :  { %p470_p1 = scmp.lt.u32.totalorder %s466_s28, %s670_s0 }
   0x5   :  { %p472_p2 = pnand %p470_p1, %p467_p0 }
   0x7   :  { %475 = shalt.err (!%p472_p2)
}
   0x8   :  { %s476_s10 = scalar_lea.vmem %s21_s25, 128  ;;  %p481_p4 = scmp.lt.s32.totalorder %s21_s25, %s21_s25 }
   0x9   :  { %p477_p3 = scmp.ne.s32.totalorder %s21_s25, %s476_s10  ;;  %p482_p5 = scmp.lt.s32.totalorder %s476_s10, %s476_s10 }
   0xb   :  { %p483_p6 = por %p482_p5, %p481_p4 }
   0xd   :  { %p484_p7 = pnand %p483_p6, %p477_p3 }
   0xf   :  { %487 = shalt.err (!%p484_p7)
}
  0x10   :  { %23 = dma.hbm_to_vmem [thread:$0]  %s670_s0, 128, %s21_s25, [#allocation3]  }
  0x11   :  { %510 = dma.done.wait [#allocation3], 128  }
  0x12   :  { %511 = vsyncadd [#allocation3], 4294967168  ;;  %v515_v0 = vmov 0.0   ;;  %vm516_vm0 = vmmov 0   ;;  %v448_v1 = vld [vmem:[%s671_s1] sm:$0xff]   ;;  %v449_v2 = vld [vmem:[%s671_s1 + $0x8] sm:$0xff]  }
  0x13   :  { %395 = vmatprep.subr.bf16.mxu0 %v515_v0  ;;  %399 = vmatprep.mubr.msk.bf16.mxu0 %vm516_vm0, %v515_v0  ;;  %v43_v3 = vld [vmem:[#allocation2] sm:$0xff]  ;;  %v451_v6 = vld [vmem:[%s673_s3 + $0x8] sm:$0xff]   ;;  %vm67_vm1 = vcmask 261120   ;;  %v452_v7 = vld [vmem:[%s673_s3 + $0x10] sm:$0xff]   ;;  %v517_v26 = vmov 0   ;;  %s518_s26 = smov [#allocation5]  }
  0x14   :  { %403 = vmatprep.subr.bf16.mxu1 %v515_v0  ;;  %419 = vmatprep.mubr.msk.bf16.mxu1 %vm516_vm0, %v515_v0  ;;  %v450_v4 = vld [vmem:[%s673_s3] sm:$0xff]   ;;  %v44_v5 = vpack.c.bf16 %v43_v3, %v43_v3  ;;  %v453_v8 = vld [vmem:[%s673_s3 + $0x18] sm:$0xff]   ;;  %v455_v10 = vld [vmem:[%s673_s3 + $0x28] sm:$0xff]   ;;  %s343_s27 = sshll.u32 %s518_s26, 4  ;;  %vm335_vm2 = vcmask 130048   ;;  %s344_s27 = int_to_ptr.vmem [resolvable:$true] %s343_s27 }
  0x15   :  { %396 = vmatpush3.bf16.msra.mxu0 %v448_v1  ;;  %404 = vmatpush3.bf16.msra.mxu1 %v450_v4  ;;  %v454_v9 = vld [vmem:[%s673_s3 + $0x20] sm:$0xff]   ;;  %v456_v11 = vld [vmem:[%s673_s3 + $0x30] sm:$0xff]   ;;  %v457_v12 = vld [vmem:[%s673_s3 + $0x38] sm:$0xff]   ;;  %p493_p9 = scmp.lt.s32.totalorder %s344_s27, %s344_s27 }
  0x16   :  { %397 = vmatprep.subr.bf16.mxu0 %v515_v0  ;;  %405 = vmatprep.subr.bf16.mxu1 %v515_v0  ;;  %v458_v13 = vld [vmem:[%s675_s5] sm:$0xff]   ;;  %v459_v14 = vld [vmem:[%s675_s5 + $0x8] sm:$0xff]   ;;  %v460_v15 = vld [vmem:[%s675_s5 + $0x10] sm:$0xff]  }
  0x17   :  { %v461_v16 = vld [vmem:[%s675_s5 + $0x18] sm:$0xff]   ;;  %v462_v17 = vld [vmem:[%s675_s5 + $0x20] sm:$0xff]   ;;  %v463_v18 = vld [vmem:[%s675_s5 + $0x28] sm:$0xff]  }
  0x18   :  { %v352_v19 = vld [vmem:[%s672_s2] ss:$0 sm:$0xff]  ;;  %v464_v28 = vld [vmem:[%s675_s5 + $0x30] sm:$0xff]   ;;  %v465_v29 = vld [vmem:[%s675_s5 + $0x38] sm:$0xff]  }
  0x19   :  { %398 = vmatpush3.bf16.msra.mxu0 %v449_v2  ;;  %406 = vmatpush3.bf16.msra.mxu1 %v451_v6  ;;  %v356_v30 = vld [vmem:[%s674_s4] ss:$0 sm:$0xff]  ;;  %s488_s4 = scalar_lea.vmem %s344_s27, 128 }
  0x1a   :  { %423 = vmatprep.subr.bf16.mxu0 %v515_v0  ;;  %407 = vmatprep.subr.bf16.mxu1 %v515_v0  ;;  %v365_v38 = vld [vmem:[%s676_s6] ss:$0 sm:$0xff]  ;;  %p489_p8 = scmp.ne.s32.totalorder %s344_s27, %s488_s4  ;;  %p494_p10 = scmp.lt.s32.totalorder %s488_s4, %s488_s4 }
  0x1c   :  { %400 = vmatmul.mubr.msk.bf16.vlgmr.msra.gmra.mrb[0].mxu0 %vm67_vm1, %v44_v5  ;;  %p495_p11 = por %p494_p10, %p493_p9 }
  0x1d   :  { %439 = vmatprep.mubr.msk.bf16.mxu0 %vm516_vm0, %v515_v0  ;;  %408 = vmatpush3.bf16.msra.mxu1 %v452_v7 }
  0x1e   :  { %409 = vmatprep.subr.bf16.mxu1 %v515_v0  ;;  %424 = vmatpush3.bf16.msra.mxu0 %v458_v13  ;;  %p496_p12 = pnand %p495_p11, %p489_p8 }
  0x1f   :  { %425 = vmatprep.subr.bf16.mxu0 %v515_v0 }
  0x21   :  { %410 = vmatpush3.bf16.msra.mxu1 %v453_v8 }
  0x22   :  { %411 = vmatprep.subr.bf16.mxu1 %v515_v0  ;;  %426 = vmatpush3.bf16.msra.mxu0 %v459_v14 }
  0x23   :  { %427 = vmatprep.subr.bf16.mxu0 %v515_v0 }
  0x25   :  { %412 = vmatpush3.bf16.msra.mxu1 %v454_v9 }
  0x26   :  { %413 = vmatprep.subr.bf16.mxu1 %v515_v0  ;;  %428 = vmatpush3.bf16.msra.mxu0 %v460_v15 }
  0x27   :  { %429 = vmatprep.subr.bf16.mxu0 %v515_v0 }
  0x29   :  { %414 = vmatpush3.bf16.msra.mxu1 %v455_v10 }
  0x2a   :  { %415 = vmatprep.subr.bf16.mxu1 %v515_v0  ;;  %430 = vmatpush3.bf16.msra.mxu0 %v461_v16 }
  0x2b   :  { %431 = vmatprep.subr.bf16.mxu0 %v515_v0 }
  0x2d   :  { %416 = vmatpush3.bf16.msra.mxu1 %v456_v11 }
  0x2e   :  { %417 = vmatprep.subr.bf16.mxu1 %v515_v0  ;;  %432 = vmatpush3.bf16.msra.mxu0 %v462_v17 }
  0x2f   :  { %433 = vmatprep.subr.bf16.mxu0 %v515_v0 }
  0x31   :  { %418 = vmatpush3.bf16.msra.mxu1 %v457_v12 }
  0x32   :  { %434 = vmatpush3.bf16.msra.mxu0 %v463_v18 }
  0x33   :  { %435 = vmatprep.subr.bf16.mxu0 %v515_v0 }
  0x36   :  { %436 = vmatpush3.bf16.msra.mxu0 %v464_v28 }
  0x37   :  { %437 = vmatprep.subr.bf16.mxu0 %v515_v0 }
  0x3a   :  { %438 = vmatpush3.bf16.msra.mxu0 %v465_v29 }
  0xef   :  { %v105_v20 = vpop.f32.mrb[0].mxu0 }
  0xf0   :  { %v106_v21 = vadd.f32 %v352_v19, %v105_v20  ;;  %v401_v22 = vpop.f32.mrb[1].mxu0 }
  0xf1   :  { %v108_v23 = vpop.f32.mrb[2].mxu0 }
  0xf2   :  { %v111_v24 = vpack.c.bf16 %v106_v21, %v106_v21  ;;  %v402_v25 = vpop.f32.mrb[3].mxu0 }
  0xf4   :  { %v112_v27 = vmax.bf16 %v517_v26, %v111_v24 }
  0xf6   :  { %420 = vmatmul.mubr.bf16.vlgmr.msra.gmra.mrb[0].mxu1 %v112_v27 }
 0x1c9   :  { %v217_v31 = vpop.f32.mrb[0].mxu1 }
 0x1ca   :  { %v218_v32 = vadd.f32 %v356_v30, %v217_v31  ;;  %v421_v33 = vpop.f32.mrb[1].mxu1 }
 0x1cb   :  { %v220_v34 = vpop.f32.mrb[2].mxu1 }
 0x1cc   :  { %v223_v35 = vpack.c.bf16 %v218_v32, %v218_v32  ;;  %v422_v36 = vpop.f32.mrb[3].mxu1 }
 0x1ce   :  { %v224_v37 = vmax.bf16 %v517_v26, %v223_v35 }
 0x1d0   :  { %440 = vmatmul.mubr.bf16.vlgmr.msra.gmra.mrb[4].mxu0 %v224_v37 }
 0x2a3   :  { %v329_v39 = vpop.f32.mrb[4].mxu0 }
 0x2a4   :  { %v330_v40 = vadd.f32 %v365_v38, %v329_v39  ;;  %v441_v41 = vpop.f32.mrb[5].mxu0 }
 0x2a5   :  { %v332_v42 = vpop.f32.mrb[6].mxu0 }
 0x2a6   :  { %v442_v43 = vpop.f32.mrb[7].mxu0  ;;  %336 = vst.msk [vmem:[#allocation5] sm:$0xff] %vm335_vm2, %v330_v40 }
 0x2a7   :  { %499 = shalt.err (!%p496_p12)
}
 0x2a8   :  { %s500_s6 = scalar_lea.hbm %s677_s7, 128 }
 0x2a9   :  { %p501_p13 = scmp.ne.s32.totalorder %s677_s7, %s500_s6  ;;  %p504_p0 = scmp.lt.u32.totalorder %s500_s6, %s677_s7 }
 0x2ab   :  { %p506_p1 = pnand %p504_p0, %p501_p13 }
 0x2ad   :  { %509 = shalt.err (!%p506_p1)
}
 0x2ae   :  { %346 = dma.vmem_to_hbm [thread:$0]  %s344_s27, 128, %s677_s7, [#allocation4]  }
 0x2af   :  { %512 = dma.done.wait [#allocation4], 128  }
 0x2b0   :  { %513 = vsyncadd [#allocation4], 4294967168 }
 0x2b1   :  { %350 = vsyncpa [#allocation3], 1 }
 0x2b2   :  { %351 = vsyncpa [#allocation4], 1 }

</bundles_post_ra>
